<compile_context>
chip_gen: v7x
topology: tpu7x:2x2x1
jax: 0.10.0
libtpu: 0.0.40
codegen_flags: <defaults>
</compile_context>

<pallas_src>
import functools

import jax
import jax.numpy as jnp
from jax.experimental import pallas as pl
from jax.experimental.pallas import tpu as pltpu

_LANE = 128
_SUBLANE = 8


def _round_up(x, m):
    return ((x + m - 1) // m) * m


def _pad_row(v, n):
    v = jnp.asarray(v, jnp.float32).reshape(-1)
    return jnp.pad(v, (0, n - v.shape[0])).reshape(1, n)


def _pad_mat(m, r, c):
    m = jnp.asarray(m, jnp.float32)
    return jnp.pad(m, ((0, r - m.shape[0]), (0, c - m.shape[1])))


def _choose_tb(batch, ci_p, ct_p, c_p, mm_itemsize, budget_bytes=40 * 1024 * 1024):
    """Largest batch tile (multiple of 8, <=512) whose working set fits the budget."""
    weight_bytes = (ci_p * ci_p + ct_p * ci_p            # w1 (split)
                    + ci_p * c_p + ct_p * c_p             # w2a (split)
                    + c_p * ci_p) * mm_itemsize           # w2b
    tb = 512
    while tb > 8:
        act_bytes = 2 * tb * (2 * ci_p + ct_p) * 4        # double-buffered img/txt/out tiles
        tmp_bytes = tb * (c_p + 2 * ci_p + ct_p) * 4      # in-kernel intermediates (rough)
        if weight_bytes + act_bytes + tmp_bytes <= budget_bytes:
            break
        tb //= 2
    return min(tb, _round_up(max(batch, 1), _SUBLANE))


def tirg_kernel(img_ref, txt_ref,                 # (TB, Ci_p), (TB, Ct_p)
                p_i_ref,                          # (8, Ci_p): sc1,sh1,sc2,sh2,b1,b2b*a1,a0,0
                p_t_ref,                          # (8, Ct_p): sc1,sh1,sc2,sh2,0,0,0,0
                w1i_ref, w1t_ref,                 # Linear1 split at Ci
                w2ai_ref, w2at_ref, b2a_ref,      # Linear2a split at Ci
                w2b_ref,                          # Linear2b (a[1] pre-folded)
                out_ref,                          # (TB, Ci_p)
                *, approx_sigmoid=False):
    img = img_ref[...]
    txt = txt_ref[...]
    mm_dtype = w1i_ref.dtype                      # bf16 (fast) or f32 (exact)

    sc1i, sh1i = p_i_ref[0:1, :], p_i_ref[1:2, :]
    sc2i, sh2i = p_i_ref[2:3, :], p_i_ref[3:4, :]
    b1, b2b, a0 = p_i_ref[4:5, :], p_i_ref[5:6, :], p_i_ref[6:7, :]
    sc1t, sh1t = p_t_ref[0:1, :], p_t_ref[1:2, :]
    sc2t, sh2t = p_t_ref[2:3, :], p_t_ref[3:4, :]

    # gated_feature_composer: BN (pre-folded) -> ReLU -> Linear(C, Ci)
    h1i = jnp.maximum(img * sc1i + sh1i, 0.0).astype(mm_dtype)
    h1t = jnp.maximum(txt * sc1t + sh1t, 0.0).astype(mm_dtype)
    f1 = (jnp.dot(h1i, w1i_ref[...], preferred_element_type=jnp.float32)
          + jnp.dot(h1t, w1t_ref[...], preferred_element_type=jnp.float32)
          + b1)

    # res_info_composer: BN -> ReLU -> Linear(C, C) -> ReLU -> Linear(C, Ci)
    h2i = jnp.maximum(img * sc2i + sh2i, 0.0).astype(mm_dtype)
    h2t = jnp.maximum(txt * sc2t + sh2t, 0.0).astype(mm_dtype)
    h2 = jnp.maximum(
        jnp.dot(h2i, w2ai_ref[...], preferred_element_type=jnp.float32)
        + jnp.dot(h2t, w2at_ref[...], preferred_element_type=jnp.float32)
        + b2a_ref[...],
        0.0).astype(mm_dtype)
    f2 = jnp.dot(h2, w2b_ref[...], preferred_element_type=jnp.float32) + b2b

    # sigmoid: exp on EUP + reciprocal (approx -> EUP vrcp on the fast path)
    sig = pl.reciprocal(1.0 + jnp.exp(-f1), approx=approx_sigmoid)
    # a[1] already folded into w2b/b2b, a[0] arrives as a lane vector.
    out_ref[...] = sig * img * a0 + f2


def tirg_forward(params, img_features, text_features, *, use_bf16=True, tb=None):
    B, Ci = img_features.shape
    Ct = text_features.shape[1]
    eps = 1e-5

    Ci_p = _round_up(Ci, _LANE)
    Ct_p = _round_up(Ct, _LANE)
    C_p = _round_up(Ci + Ct, _LANE)

    f32 = jnp.float32
    mm_dtype = jnp.bfloat16 if use_bf16 else jnp.float32

    img_f = img_features.astype(f32)
    txt_f = text_features.astype(f32)

    # --- BatchNorm1d training-mode stats, hoisted (biased var over the batch),
    #     folded with gamma/beta into per-channel scale/shift. --------------
    def stats(feat):
        mean = jnp.mean(feat, axis=0)
        var = jnp.mean((feat - mean) ** 2, axis=0)
        return mean, jax.lax.rsqrt(var + eps)

    mean_i, rstd_i = stats(img_f)
    mean_t, rstd_t = stats(txt_f)

    def fold(gamma, beta, mean, rstd):
        scale = gamma * rstd
        shift = beta - scale * mean
        return scale, shift

    g1, be1 = params["bn1_gamma"], params["bn1_beta"]
    g2, be2 = params["bn2_gamma"], params["bn2_beta"]
    sc1i, sh1i = fold(g1[:Ci], be1[:Ci], mean_i, rstd_i)
    sc1t, sh1t = fold(g1[Ci:], be1[Ci:], mean_t, rstd_t)
    sc2i, sh2i = fold(g2[:Ci], be2[:Ci], mean_i, rstd_i)
    sc2t, sh2t = fold(g2[Ci:], be2[Ci:], mean_t, rstd_t)

    # --- Weights: split at the img/text boundary (kills the HBM concat),
    #     lane-pad, pre-cast to the matmul dtype; fold a[1] into Linear2b. ---
    a0 = params["a"][0].astype(f32)
    a1 = params["a"][1].astype(f32)
    w1, w2a, w2b = params["w1"], params["w2a"], params["w2b"]
    w1i = _pad_mat(w1[:Ci], Ci_p, Ci_p).astype(mm_dtype)
    w1t = _pad_mat(w1[Ci:], Ct_p, Ci_p).astype(mm_dtype)
    w2ai = _pad_mat(w2a[:Ci], Ci_p, C_p).astype(mm_dtype)
    w2at = _pad_mat(w2a[Ci:], Ct_p, C_p).astype(mm_dtype)
    w2bp = _pad_mat(w2b * a1, C_p, Ci_p).astype(mm_dtype)
    b2ap = _pad_row(params["b2a"], C_p)

    # --- Per-channel vectors packed into two (8, lanes) slabs. --------------
    p_i = jnp.concatenate([
        _pad_row(sc1i, Ci_p), _pad_row(sh1i, Ci_p),
        _pad_row(sc2i, Ci_p), _pad_row(sh2i, Ci_p),
        _pad_row(params["b1"], Ci_p), _pad_row(params["b2b"] * a1, Ci_p),
        jnp.full((1, Ci_p), a0, f32), jnp.zeros((1, Ci_p), f32),
    ], axis=0)
    p_t = jnp.concatenate([
        _pad_row(sc1t, Ct_p), _pad_row(sh1t, Ct_p),
        _pad_row(sc2t, Ct_p), _pad_row(sh2t, Ct_p),
        jnp.zeros((4, Ct_p), f32),
    ], axis=0)

    # --- Batch tiling / padding. -------------------------------------------
    if tb is None:
        tb = _choose_tb(B, Ci_p, Ct_p, C_p, jnp.dtype(mm_dtype).itemsize)
    B_p = _round_up(B, tb)
    img_p = _pad_mat(img_f, B_p, Ci_p)
    txt_p = _pad_mat(txt_f, B_p, Ct_p)
    grid = (B_p // tb,)

    act = lambda i: (i, 0)      # batch-tiled activations / output
    res = lambda i: (0, 0)      # VMEM-resident parameters

    grid_spec = pltpu.PrefetchScalarGridSpec(
        num_scalar_prefetch=0,
        grid=grid,
        in_specs=[
            pl.BlockSpec((tb, Ci_p), act),                # img tile
            pl.BlockSpec((tb, Ct_p), act),                # txt tile
            pl.BlockSpec((8, Ci_p), res),                 # packed img-width vectors
            pl.BlockSpec((8, Ct_p), res),                 # packed txt-width vectors
            pl.BlockSpec((Ci_p, Ci_p), res),              # w1i
            pl.BlockSpec((Ct_p, Ci_p), res),              # w1t
            pl.BlockSpec((Ci_p, C_p), res),               # w2ai
            pl.BlockSpec((Ct_p, C_p), res),               # w2at
            pl.BlockSpec((1, C_p), res),                  # b2a
            pl.BlockSpec((C_p, Ci_p), res),               # w2b
        ],
        out_specs=pl.BlockSpec((tb, Ci_p), act),
    )

    # Advisory scheduling hint (matmul flops + one exp per output element).
    mm_flops = 2 * B_p * (Ci_p * Ci_p + Ct_p * Ci_p + Ci_p * C_p
                          + Ct_p * C_p + C_p * Ci_p)
    bytes_acc = (img_p.size + txt_p.size + B_p * Ci_p) * 4 + (
        w1i.size + w1t.size + w2ai.size + w2at.size + w2bp.size
    ) * jnp.dtype(mm_dtype).itemsize
    cost = pl.CostEstimate(flops=mm_flops, transcendentals=B_p * Ci_p,
                           bytes_accessed=bytes_acc)

    kernel = functools.partial(tirg_kernel, approx_sigmoid=use_bf16)

    out_p = pl.pallas_call(
        kernel,
        out_shape=jax.ShapeDtypeStruct((B_p, Ci_p), f32),
        grid_spec=grid_spec,
        compiler_params=pltpu.CompilerParams(
            dimension_semantics=("parallel",),          # shards batch tiles over 2 TCs on v7x
            vmem_limit_bytes=48 * 1024 * 1024,          # resident weights + tiles, < v7x 64 MiB
        ),
        cost_estimate=cost,
    )(img_p, txt_p, p_i, p_t, w1i, w1t, w2ai, w2at, b2ap, w2bp)

    return out_p[:B, :Ci]


def tirg_reference(params, img_features, text_features):
    """Pure-JAX reference mirroring the PyTorch forward (training-mode BN)."""
    x = jnp.concatenate([img_features, text_features], axis=1)
    eps = 1e-5
    mean = jnp.mean(x, axis=0, keepdims=True)
    var = jnp.mean((x - mean) ** 2, axis=0, keepdims=True)
    xhat = (x - mean) / jnp.sqrt(var + eps)

    h1 = jnp.maximum(xhat * params["bn1_gamma"] + params["bn1_beta"], 0.0)
    f1 = h1 @ params["w1"] + params["b1"]

    h2 = jnp.maximum(xhat * params["bn2_gamma"] + params["bn2_beta"], 0.0)
    h2 = jnp.maximum(h2 @ params["w2a"] + params["b2a"], 0.0)
    f2 = h2 @ params["w2b"] + params["b2b"]

    a = params["a"]
    return jax.nn.sigmoid(f1) * img_features * a[0] + f2 * a[1]


def make_params(key, text_channel, img_channel):
    C = img_channel + text_channel
    Ci = img_channel
    ks = jax.random.split(key, 6)
    u = lambda k, shape, bound: jax.random.uniform(
        k, shape, jnp.float32, minval=-bound, maxval=bound)
    # nn.Linear-style uniform(-1/sqrt(fan_in), 1/sqrt(fan_in)) init, stored as (in, out).
    return {
        "a": jnp.array([1.0, 10.0, 1.0, 1.0], jnp.float32),
        "bn1_gamma": jnp.ones((C,), jnp.float32),
        "bn1_beta": jnp.zeros((C,), jnp.float32),
        "w1": u(ks[0], (C, Ci), 1.0 / jnp.sqrt(C)),
        "b1": u(ks[1], (Ci,), 1.0 / jnp.sqrt(C)),
        "bn2_gamma": jnp.ones((C,), jnp.float32),
        "bn2_beta": jnp.zeros((C,), jnp.float32),
        "w2a": u(ks[2], (C, C), 1.0 / jnp.sqrt(C)),
        "b2a": u(ks[3], (C,), 1.0 / jnp.sqrt(C)),
        "w2b": u(ks[4], (C, Ci), 1.0 / jnp.sqrt(C)),
        "b2b": u(ks[5], (Ci,), 1.0 / jnp.sqrt(C)),
    }


if __name__ == "__main__":
    B, text_channel, img_channel = 8, 16, 32

    key = jax.random.PRNGKey(0)
    k_img, k_txt, k_par = jax.random.split(key, 3)
    img_features = jax.random.normal(k_img, (B, img_channel), jnp.float32)
    text_features = jax.random.normal(k_txt, (B, text_channel), jnp.float32)
    params = make_params(k_par, text_channel, img_channel)

    ref = tirg_reference(params, img_features, text_features)

    # Exact path: f32 MXU operands, exact reciprocal.
    out_f32 = jax.block_until_ready(
        tirg_forward(params, img_features, text_features, use_bf16=False))
    assert out_f32.shape == (B, img_channel)
    assert jnp.allclose(out_f32, ref, atol=1e-4, rtol=1e-4), "f32 kernel mismatch vs reference"

    # Fast path: bf16 MXU operands (f32 accumulation) + approx sigmoid reciprocal.
    out_bf16 = jax.block_until_ready(
        tirg_forward(params, img_features, text_features, use_bf16=True))
    err = jnp.max(jnp.abs(out_bf16 - ref))
    scale = jnp.max(jnp.abs(ref))
    assert err <= 0.03 * scale + 1e-3, f"bf16 kernel mismatch: max_err={err}, scale={scale}"

    print("KERNEL_OK")
</pallas_src>

<mosaic_0001>
module attributes {stable_mosaic.version = 11 : i64} {
  func.func @tirg_kernel(%arg0: i32, %arg1: memref<8x128xf32, #tpu.memory_space<vmem>>, %arg2: memref<8x128xf32, #tpu.memory_space<vmem>>, %arg3: memref<8x128xf32, #tpu.memory_space<vmem>>, %arg4: memref<8x128xf32, #tpu.memory_space<vmem>>, %arg5: memref<128x128xf32, #tpu.memory_space<vmem>>, %arg6: memref<128x128xf32, #tpu.memory_space<vmem>>, %arg7: memref<128x128xf32, #tpu.memory_space<vmem>>, %arg8: memref<128x128xf32, #tpu.memory_space<vmem>>, %arg9: memref<1x128xf32, #tpu.memory_space<vmem>>, %arg10: memref<128x128xf32, #tpu.memory_space<vmem>>, %arg11: memref<8x128xf32, #tpu.memory_space<vmem>>) attributes {dimension_semantics = [#tpu.dimension_semantics<parallel>], iteration_bounds = array<i64: 1>, scalar_prefetch = 0 : i64, scratch_operands = 0 : i64, tpu.core_type = #tpu.core_type<tc>, window_params = [{transform_indices = @transform_0, window_bounds = array<i64: 8, 128>}, {transform_indices = @transform_1, window_bounds = array<i64: 8, 128>}, {pipeline_mode = #tpu.pipeline_mode<synchronous>, transform_indices = @transform_2, window_bounds = array<i64: 8, 128>}, {pipeline_mode = #tpu.pipeline_mode<synchronous>, transform_indices = @transform_3, window_bounds = array<i64: 8, 128>}, {pipeline_mode = #tpu.pipeline_mode<synchronous>, transform_indices = @transform_4, window_bounds = array<i64: 128, 128>}, {pipeline_mode = #tpu.pipeline_mode<synchronous>, transform_indices = @transform_5, window_bounds = array<i64: 128, 128>}, {pipeline_mode = #tpu.pipeline_mode<synchronous>, transform_indices = @transform_6, window_bounds = array<i64: 128, 128>}, {pipeline_mode = #tpu.pipeline_mode<synchronous>, transform_indices = @transform_7, window_bounds = array<i64: 128, 128>}, {pipeline_mode = #tpu.pipeline_mode<synchronous>, transform_indices = @transform_8, window_bounds = array<i64: 1, 128>}, {pipeline_mode = #tpu.pipeline_mode<synchronous>, transform_indices = @transform_9, window_bounds = array<i64: 128, 128>}, {transform_indices = @transform_10, window_bounds = array<i64: 8, 128>}]} {
    %c0 = arith.constant 0 : index
    %c0_0 = arith.constant 0 : index
    %0 = vector.load %arg1[%c0, %c0_0] : memref<8x128xf32, #tpu.memory_space<vmem>>, vector<8x128xf32>
    %c0_1 = arith.constant 0 : index
    %c0_2 = arith.constant 0 : index
    %1 = vector.load %arg2[%c0_1, %c0_2] : memref<8x128xf32, #tpu.memory_space<vmem>>, vector<8x128xf32>
    %c0_3 = arith.constant 0 : index
    %c0_4 = arith.constant 0 : index
    %2 = vector.load %arg3[%c0_3, %c0_4] : memref<8x128xf32, #tpu.memory_space<vmem>>, vector<1x128xf32>
    %c1 = arith.constant 1 : index
    %c0_5 = arith.constant 0 : index
    %3 = vector.load %arg3[%c1, %c0_5] : memref<8x128xf32, #tpu.memory_space<vmem>>, vector<1x128xf32>
    %c2 = arith.constant 2 : index
    %c0_6 = arith.constant 0 : index
    %4 = vector.load %arg3[%c2, %c0_6] : memref<8x128xf32, #tpu.memory_space<vmem>>, vector<1x128xf32>
    %c3 = arith.constant 3 : index
    %c0_7 = arith.constant 0 : index
    %5 = vector.load %arg3[%c3, %c0_7] : memref<8x128xf32, #tpu.memory_space<vmem>>, vector<1x128xf32>
    %c4 = arith.constant 4 : index
    %c0_8 = arith.constant 0 : index
    %6 = vector.load %arg3[%c4, %c0_8] : memref<8x128xf32, #tpu.memory_space<vmem>>, vector<1x128xf32>
    %c5 = arith.constant 5 : index
    %c0_9 = arith.constant 0 : index
    %7 = vector.load %arg3[%c5, %c0_9] : memref<8x128xf32, #tpu.memory_space<vmem>>, vector<1x128xf32>
    %c6 = arith.constant 6 : index
    %c0_10 = arith.constant 0 : index
    %8 = vector.load %arg3[%c6, %c0_10] : memref<8x128xf32, #tpu.memory_space<vmem>>, vector<1x128xf32>
    %c0_11 = arith.constant 0 : index
    %c0_12 = arith.constant 0 : index
    %9 = vector.load %arg4[%c0_11, %c0_12] : memref<8x128xf32, #tpu.memory_space<vmem>>, vector<1x128xf32>
    %c1_13 = arith.constant 1 : index
    %c0_14 = arith.constant 0 : index
    %10 = vector.load %arg4[%c1_13, %c0_14] : memref<8x128xf32, #tpu.memory_space<vmem>>, vector<1x128xf32>
    %c2_15 = arith.constant 2 : index
    %c0_16 = arith.constant 0 : index
    %11 = vector.load %arg4[%c2_15, %c0_16] : memref<8x128xf32, #tpu.memory_space<vmem>>, vector<1x128xf32>
    %c3_17 = arith.constant 3 : index
    %c0_18 = arith.constant 0 : index
    %12 = vector.load %arg4[%c3_17, %c0_18] : memref<8x128xf32, #tpu.memory_space<vmem>>, vector<1x128xf32>
    %13 = vector.broadcast %2 : vector<1x128xf32> to vector<8x128xf32>
    %14 = arith.mulf %0, %13 : vector<8x128xf32>
    %15 = vector.broadcast %3 : vector<1x128xf32> to vector<8x128xf32>
    %16 = arith.addf %14, %15 : vector<8x128xf32>
    %cst = arith.constant 0.000000e+00 : f32
    %17 = vector.broadcast %cst : f32 to vector<8x128xf32>
    %18 = arith.maximumf %16, %17 : vector<8x128xf32>
    %19 = vector.broadcast %9 : vector<1x128xf32> to vector<8x128xf32>
    %20 = arith.mulf %1, %19 : vector<8x128xf32>
    %21 = vector.broadcast %10 : vector<1x128xf32> to vector<8x128xf32>
    %22 = arith.addf %20, %21 : vector<8x128xf32>
    %cst_19 = arith.constant 0.000000e+00 : f32
    %23 = vector.broadcast %cst_19 : f32 to vector<8x128xf32>
    %24 = arith.maximumf %22, %23 : vector<8x128xf32>
    %c0_20 = arith.constant 0 : index
    %c0_21 = arith.constant 0 : index
    %25 = vector.load %arg5[%c0_20, %c0_21] : memref<128x128xf32, #tpu.memory_space<vmem>>, vector<128x128xf32>
    %cst_22 = arith.constant dense<0.000000e+00> : vector<8x128xf32>
    %26 = tpu.matmul %18, %25, %cst_22 {dimension_numbers = #tpu.dot_dimension_numbers<[1], [0], [0], [1], [0, 0, 1, 1], [], []>} : vector<8x128xf32>, vector<128x128xf32>, vector<8x128xf32> -> vector<8x128xf32>
    %c0_23 = arith.constant 0 : index
    %c0_24 = arith.constant 0 : index
    %27 = vector.load %arg6[%c0_23, %c0_24] : memref<128x128xf32, #tpu.memory_space<vmem>>, vector<128x128xf32>
    %cst_25 = arith.constant dense<0.000000e+00> : vector<8x128xf32>
    %28 = tpu.matmul %24, %27, %cst_25 {dimension_numbers = #tpu.dot_dimension_numbers<[1], [0], [0], [1], [0, 0, 1, 1], [], []>} : vector<8x128xf32>, vector<128x128xf32>, vector<8x128xf32> -> vector<8x128xf32>
    %29 = arith.addf %26, %28 : vector<8x128xf32>
    %30 = vector.broadcast %6 : vector<1x128xf32> to vector<8x128xf32>
    %31 = arith.addf %29, %30 : vector<8x128xf32>
    %32 = vector.broadcast %4 : vector<1x128xf32> to vector<8x128xf32>
    %33 = arith.mulf %0, %32 : vector<8x128xf32>
    %34 = vector.broadcast %5 : vector<1x128xf32> to vector<8x128xf32>
    %35 = arith.addf %33, %34 : vector<8x128xf32>
    %cst_26 = arith.constant 0.000000e+00 : f32
    %36 = vector.broadcast %cst_26 : f32 to vector<8x128xf32>
    %37 = arith.maximumf %35, %36 : vector<8x128xf32>
    %38 = vector.broadcast %11 : vector<1x128xf32> to vector<8x128xf32>
    %39 = arith.mulf %1, %38 : vector<8x128xf32>
    %40 = vector.broadcast %12 : vector<1x128xf32> to vector<8x128xf32>
    %41 = arith.addf %39, %40 : vector<8x128xf32>
    %cst_27 = arith.constant 0.000000e+00 : f32
    %42 = vector.broadcast %cst_27 : f32 to vector<8x128xf32>
    %43 = arith.maximumf %41, %42 : vector<8x128xf32>
    %c0_28 = arith.constant 0 : index
    %c0_29 = arith.constant 0 : index
    %44 = vector.load %arg7[%c0_28, %c0_29] : memref<128x128xf32, #tpu.memory_space<vmem>>, vector<128x128xf32>
    %cst_30 = arith.constant dense<0.000000e+00> : vector<8x128xf32>
    %45 = tpu.matmul %37, %44, %cst_30 {dimension_numbers = #tpu.dot_dimension_numbers<[1], [0], [0], [1], [0, 0, 1, 1], [], []>} : vector<8x128xf32>, vector<128x128xf32>, vector<8x128xf32> -> vector<8x128xf32>
    %c0_31 = arith.constant 0 : index
    %c0_32 = arith.constant 0 : index
    %46 = vector.load %arg8[%c0_31, %c0_32] : memref<128x128xf32, #tpu.memory_space<vmem>>, vector<128x128xf32>
    %cst_33 = arith.constant dense<0.000000e+00> : vector<8x128xf32>
    %47 = tpu.matmul %43, %46, %cst_33 {dimension_numbers = #tpu.dot_dimension_numbers<[1], [0], [0], [1], [0, 0, 1, 1], [], []>} : vector<8x128xf32>, vector<128x128xf32>, vector<8x128xf32> -> vector<8x128xf32>
    %48 = arith.addf %45, %47 : vector<8x128xf32>
    %c0_34 = arith.constant 0 : index
    %c0_35 = arith.constant 0 : index
    %49 = vector.load %arg9[%c0_34, %c0_35] : memref<1x128xf32, #tpu.memory_space<vmem>>, vector<1x128xf32>
    %50 = vector.broadcast %49 : vector<1x128xf32> to vector<8x128xf32>
    %51 = arith.addf %48, %50 : vector<8x128xf32>
    %cst_36 = arith.constant 0.000000e+00 : f32
    %52 = vector.broadcast %cst_36 : f32 to vector<8x128xf32>
    %53 = arith.maximumf %51, %52 : vector<8x128xf32>
    %c0_37 = arith.constant 0 : index
    %c0_38 = arith.constant 0 : index
    %54 = vector.load %arg10[%c0_37, %c0_38] : memref<128x128xf32, #tpu.memory_space<vmem>>, vector<128x128xf32>
    %cst_39 = arith.constant dense<0.000000e+00> : vector<8x128xf32>
    %55 = tpu.matmul %53, %54, %cst_39 {dimension_numbers = #tpu.dot_dimension_numbers<[1], [0], [0], [1], [0, 0, 1, 1], [], []>} : vector<8x128xf32>, vector<128x128xf32>, vector<8x128xf32> -> vector<8x128xf32>
    %56 = vector.broadcast %7 : vector<1x128xf32> to vector<8x128xf32>
    %57 = arith.addf %55, %56 : vector<8x128xf32>
    %cst_40 = arith.constant 0.000000e+00 : f32
    %58 = vector.broadcast %cst_40 : f32 to vector<8x128xf32>
    %59 = arith.subf %58, %31 : vector<8x128xf32>
    %60 = math.exp %59 : vector<8x128xf32>
    %cst_41 = arith.constant 1.000000e+00 : f32
    %61 = vector.broadcast %cst_41 : f32 to vector<8x128xf32>
    %62 = arith.addf %61, %60 : vector<8x128xf32>
    %63 = tpu.reciprocal %62 : vector<8x128xf32> -> vector<8x128xf32>
    %64 = arith.mulf %63, %0 : vector<8x128xf32>
    %65 = vector.broadcast %8 : vector<1x128xf32> to vector<8x128xf32>
    %66 = arith.mulf %64, %65 : vector<8x128xf32>
    %67 = arith.addf %66, %57 : vector<8x128xf32>
    %c0_42 = arith.constant 0 : index
    %c0_43 = arith.constant 0 : index
    %68 = vector.load %arg11[%c0_42, %c0_43] : memref<8x128xf32, #tpu.memory_space<vmem>>, vector<8x128xf32>
    tpu.vector_store %arg11[%c0_42, %c0_43], %67 {strides = array<i32>} : memref<8x128xf32, #tpu.memory_space<vmem>>, vector<8x128xf32>,
    return
  }
  func.func @transform_0(%arg0: i32) -> (i32, i32) {
    %c0_i32 = arith.constant 0 : i32
    %c0_i32_0 = arith.constant 0 : i32
    return %arg0, %c0_i32 : i32, i32
  }
  func.func @transform_1(%arg0: i32) -> (i32, i32) {
    %c0_i32 = arith.constant 0 : i32
    %c0_i32_0 = arith.constant 0 : i32
    return %arg0, %c0_i32 : i32, i32
  }
  func.func @transform_2(%arg0: i32) -> (i32, i32) {
    %c0_i32 = arith.constant 0 : i32
    %c0_i32_0 = arith.constant 0 : i32
    %c0_i32_1 = arith.constant 0 : i32
    return %c0_i32, %c0_i32_0 : i32, i32
  }
  func.func @transform_3(%arg0: i32) -> (i32, i32) {
    %c0_i32 = arith.constant 0 : i32
    %c0_i32_0 = arith.constant 0 : i32
    %c0_i32_1 = arith.constant 0 : i32
    return %c0_i32, %c0_i32_0 : i32, i32
  }
  func.func @transform_4(%arg0: i32) -> (i32, i32) {
    %c0_i32 = arith.constant 0 : i32
    %c0_i32_0 = arith.constant 0 : i32
    %c0_i32_1 = arith.constant 0 : i32
    return %c0_i32, %c0_i32_0 : i32, i32
  }
  func.func @transform_5(%arg0: i32) -> (i32, i32) {
    %c0_i32 = arith.constant 0 : i32
    %c0_i32_0 = arith.constant 0 : i32
    %c0_i32_1 = arith.constant 0 : i32
    return %c0_i32, %c0_i32_0 : i32, i32
  }
  func.func @transform_6(%arg0: i32) -> (i32, i32) {
    %c0_i32 = arith.constant 0 : i32
    %c0_i32_0 = arith.constant 0 : i32
    %c0_i32_1 = arith.constant 0 : i32
    return %c0_i32, %c0_i32_0 : i32, i32
  }
  func.func @transform_7(%arg0: i32) -> (i32, i32) {
    %c0_i32 = arith.constant 0 : i32
    %c0_i32_0 = arith.constant 0 : i32
    %c0_i32_1 = arith.constant 0 : i32
    return %c0_i32, %c0_i32_0 : i32, i32
  }
  func.func @transform_8(%arg0: i32) -> (i32, i32) {
    %c0_i32 = arith.constant 0 : i32
    %c0_i32_0 = arith.constant 0 : i32
    %c0_i32_1 = arith.constant 0 : i32
    return %c0_i32, %c0_i32_0 : i32, i32
  }
  func.func @transform_9(%arg0: i32) -> (i32, i32) {
    %c0_i32 = arith.constant 0 : i32
    %c0_i32_0 = arith.constant 0 : i32
    %c0_i32_1 = arith.constant 0 : i32
    return %c0_i32, %c0_i32_0 : i32, i32
  }
  func.func @transform_10(%arg0: i32) -> (i32, i32) {
    %c0_i32 = arith.constant 0 : i32
    %c0_i32_0 = arith.constant 0 : i32
    return %arg0, %c0_i32 : i32, i32
  }
}

</mosaic_0001>

<bundles_post_ra>
// kernel: tpu_custom_call.1
= control target key start
LH: loop header
LB: loop body
LE: loop exit
PB: predicated region body
PF: predicated region fallthrough
CT: control target
= control target key end

     0   :  { %15 = vsyncpa [#allocation3], 0  ;;  %s1583_s0 = inlined_call_operand.hbm [shape: f32[8,128], index: 0, kind: input, shape index: {}]   ;;  %s1584_s1 = inlined_call_operand.hbm [shape: f32[8,128], index: 1, kind: input, shape index: {}]   ;;  %s1585_s2 = inlined_call_operand.hbm [shape: f32[8,128], index: 2, kind: input, shape index: {}]   ;;  %s1586_s3 = inlined_call_operand.vmem [shape: f32[8,128], index: 3, kind: input, shape index: {}]   ;;  %s1587_s4 = inlined_call_operand.hbm [shape: f32[128,128], index: 4, kind: input, shape index: {}]   ;;  %s1588_s5 = inlined_call_operand.hbm [shape: f32[128,128], index: 5, kind: input, shape index: {}]   ;;  %s1589_s6 = inlined_call_operand.hbm [shape: f32[128,128], index: 6, kind: input, shape index: {}]   ;;  %s1590_s7 = inlined_call_operand.hbm [shape: f32[128,128], index: 7, kind: input, shape index: {}]   ;;  %s1591_s8 = inlined_call_operand.vmem [shape: f32[1,128], index: 8, kind: input, shape index: {}]   ;;  %s1592_s9 = inlined_call_operand.hbm [shape: f32[128,128], index: 9, kind: input, shape index: {}]   ;;  %s1593_s10 = inlined_call_operand.hbm [shape: f32[8,128], index: 10, kind: output, shape index: {}]  }
   0x1   :  { %16 = vsyncpa [#allocation6], 0 }
   0x2   :  { %17 = vsyncpa [#allocation9], 0 }
   0x3   :  { %18 = vsyncpa [#allocation12], 0 }
   0x4   :  { %19 = vsyncpa [#allocation15], 0 }
   0x5   :  { %20 = vsyncpa [#allocation4], 0  ;;  %s1296_s13 = smov [#allocation5]   ;;  %s1297_s15 = smov [#allocation8]  }
   0x6   :  { %s37_s14 = sshll.u32 %s1296_s13, 4  ;;  %s58_s16 = sshll.u32 %s1297_s15, 4  ;;  %s38_s14 = int_to_ptr.vmem [resolvable:$true] %s37_s14  ;;  %s1365_s16 = int_to_ptr.vmem [resolvable:$true] %s58_s16 }
   0x7   :  { %s1086_s19 = scalar_lea.hbm %s1584_s1, 128 }
   0x8   :  { %p1087_p0 = scmp.ne.s32.totalorder %s1584_s1, %s1086_s19  ;;  %p1090_p1 = scmp.lt.u32.totalorder %s1086_s19, %s1584_s1 }
   0xa   :  { %p1092_p2 = pnand %p1090_p1, %p1087_p0 }
   0xc   :  { %1095 = shalt.err (!%p1092_p2)
}
   0xd   :  { %s1096_s24 = scalar_lea.vmem %s38_s14, 128  ;;  %p1101_p4 = scmp.lt.s32.totalorder %s38_s14, %s38_s14 }
   0xe   :  { %p1097_p3 = scmp.ne.s32.totalorder %s38_s14, %s1096_s24  ;;  %p1102_p5 = scmp.lt.s32.totalorder %s1096_s24, %s1096_s24 }
  0x10   :  { %p1103_p6 = por %p1102_p5, %p1101_p4 }
  0x12   :  { %p1104_p7 = pnand %p1103_p6, %p1097_p3 }
  0x14   :  { %1107 = shalt.err (!%p1104_p7)
}
  0x15   :  { %40 = dma.hbm_to_vmem [thread:$0]  %s1584_s1, 128, %s38_s14, [#allocation6]  }
  0x16   :  { %s1108_s29 = scalar_lea.hbm %s1587_s4, 2048 }
  0x17   :  { %p1109_p8 = scmp.ne.s32.totalorder %s1587_s4, %s1108_s29  ;;  %p1112_p9 = scmp.lt.u32.totalorder %s1108_s29, %s1587_s4 }
  0x19   :  { %p1114_p10 = pnand %p1112_p9, %p1109_p8 }
  0x1b   :  { %1117 = shalt.err (!%p1114_p10)
}
  0x1c   :  { %s1118_s15 = scalar_lea.vmem %s1365_s16, 2048  ;;  %p1123_p12 = scmp.lt.s32.totalorder %s1365_s16, %s1365_s16 }
  0x1d   :  { %p1119_p11 = scmp.ne.s32.totalorder %s1365_s16, %s1118_s15  ;;  %p1124_p13 = scmp.lt.s32.totalorder %s1118_s15, %s1118_s15 }
  0x1f   :  { %p1125_p0 = por %p1124_p13, %p1123_p12 }
  0x21   :  { %p1126_p1 = pnand %p1125_p0, %p1119_p11 }
  0x23   :  { %1129 = shalt.err (!%p1126_p1)
}
  0x24   :  { %s1298_s1 = smov 128   ;;  %s1299_s14 = smov 8  }
  0x25   :  { %64 = dma.hbm_to_vmem [thread:$0]  %s1587_s4, 2048, %s1365_s16, [#allocation9], %s1298_s1, %s1298_s1, %s1299_s14  }
  0x26   :  { %s1300_s19 = smov [#allocation11]   ;;  %s1301_s21 = smov [#allocation2]  }
  0x27   :  { %s82_s20 = sshll.u32 %s1300_s19, 4  ;;  %s27_s22 = sshll.u32 %s1301_s21, 4  ;;  %s83_s20 = int_to_ptr.vmem [resolvable:$true] %s82_s20  ;;  %s28_s22 = int_to_ptr.vmem [resolvable:$true] %s27_s22 }
  0x28   :  { %s1130_s25 = scalar_lea.hbm %s1589_s6, 2048 }
  0x29   :  { %p1131_p2 = scmp.ne.s32.totalorder %s1589_s6, %s1130_s25  ;;  %p1134_p3 = scmp.lt.u32.totalorder %s1130_s25, %s1589_s6 }
  0x2b   :  { %p1136_p4 = pnand %p1134_p3, %p1131_p2 }
  0x2d   :  { %1139 = shalt.err (!%p1136_p4)
}
  0x2e   :  { %s1140_s4 = scalar_lea.vmem %s83_s20, 2048  ;;  %p1145_p6 = scmp.lt.s32.totalorder %s83_s20, %s83_s20 }
  0x2f   :  { %p1141_p5 = scmp.ne.s32.totalorder %s83_s20, %s1140_s4  ;;  %p1146_p7 = scmp.lt.s32.totalorder %s1140_s4, %s1140_s4 }
  0x31   :  { %p1147_p8 = por %p1146_p7, %p1145_p6 }
  0x33   :  { %p1148_p9 = pnand %p1147_p8, %p1141_p5 }
  0x35   :  { %1151 = shalt.err (!%p1148_p9)
}
  0x36   :  { %88 = dma.hbm_to_vmem [thread:$0]  %s1589_s6, 2048, %s83_s20, [#allocation12], %s1298_s1, %s1298_s1, %s1299_s14  }
  0x37   :  { %s1152_s13 = scalar_lea.hbm %s1583_s0, 128 }
  0x38   :  { %p1153_p10 = scmp.ne.s32.totalorder %s1583_s0, %s1152_s13  ;;  %p1156_p11 = scmp.lt.u32.totalorder %s1152_s13, %s1583_s0 }
  0x3a   :  { %p1158_p12 = pnand %p1156_p11, %p1153_p10 }
  0x3c   :  { %1161 = shalt.err (!%p1158_p12)
}
  0x3d   :  { %s1162_s21 = scalar_lea.vmem %s28_s22, 128  ;;  %p1167_p0 = scmp.lt.s32.totalorder %s28_s22, %s28_s22 }
  0x3e   :  { %p1163_p13 = scmp.ne.s32.totalorder %s28_s22, %s1162_s21  ;;  %p1168_p1 = scmp.lt.s32.totalorder %s1162_s21, %s1162_s21 }
  0x40   :  { %p1169_p2 = por %p1168_p1, %p1167_p0 }
  0x42   :  { %p1170_p3 = pnand %p1169_p2, %p1163_p13 }
  0x44   :  { %1173 = shalt.err (!%p1170_p3)
}
  0x45   :  { %30 = dma.hbm_to_vmem [thread:$0]  %s1583_s0, 128, %s28_s22, [#allocation3]  }
  0x46   :  { %s1302_s23 = smov [#allocation7]   ;;  %s1303_s25 = smov [#allocation10]  }
  0x47   :  { %s47_s24 = sshll.u32 %s1302_s23, 4  ;;  %s70_s26 = sshll.u32 %s1303_s25, 4  ;;  %s48_s24 = int_to_ptr.vmem [resolvable:$true] %s47_s24  ;;  %s1426_s26 = int_to_ptr.vmem [resolvable:$true] %s70_s26 }
  0x48   :  { %s1174_s29 = scalar_lea.hbm %s1585_s2, 128 }
  0x49   :  { %p1175_p4 = scmp.ne.s32.totalorder %s1585_s2, %s1174_s29  ;;  %p1178_p5 = scmp.lt.u32.totalorder %s1174_s29, %s1585_s2 }
  0x4b   :  { %p1180_p6 = pnand %p1178_p5, %p1175_p4 }
  0x4d   :  { %1183 = shalt.err (!%p1180_p6)
}
  0x4e   :  { %s1184_s0 = scalar_lea.vmem %s48_s24, 128  ;;  %p1189_p8 = scmp.lt.s32.totalorder %s48_s24, %s48_s24 }
  0x4f   :  { %p1185_p7 = scmp.ne.s32.totalorder %s48_s24, %s1184_s0  ;;  %p1190_p9 = scmp.lt.s32.totalorder %s1184_s0, %s1184_s0 }
  0x51   :  { %p1191_p10 = por %p1190_p9, %p1189_p8 }
  0x53   :  { %p1192_p11 = pnand %p1191_p10, %p1185_p7 }
  0x55   :  { %1195 = shalt.err (!%p1192_p11)
}
  0x56   :  { %50 = dma.hbm_to_vmem [thread:$0]  %s1585_s2, 128, %s48_s24, [#allocation6]  }
  0x57   :  { %s1196_s17 = scalar_lea.hbm %s1588_s5, 2048 }
  0x58   :  { %p1197_p12 = scmp.ne.s32.totalorder %s1588_s5, %s1196_s17  ;;  %p1200_p13 = scmp.lt.u32.totalorder %s1196_s17, %s1588_s5 }
  0x5a   :  { %p1202_p0 = pnand %p1200_p13, %p1197_p12 }
  0x5c   :  { %1205 = shalt.err (!%p1202_p0)
}
  0x5d   :  { %s1206_s20 = scalar_lea.vmem %s1426_s26, 2048  ;;  %p1211_p2 = scmp.lt.s32.totalorder %s1426_s26, %s1426_s26 }
  0x5e   :  { %p1207_p1 = scmp.ne.s32.totalorder %s1426_s26, %s1206_s20  ;;  %p1212_p3 = scmp.lt.s32.totalorder %s1206_s20, %s1206_s20 }
  0x60   :  { %p1213_p4 = por %p1212_p3, %p1211_p2 }
  0x62   :  { %p1214_p5 = pnand %p1213_p4, %p1207_p1 }
  0x64   :  { %1217 = shalt.err (!%p1214_p5)
}
  0x65   :  { %76 = dma.hbm_to_vmem [thread:$0]  %s1588_s5, 2048, %s1426_s26, [#allocation9], %s1298_s1, %s1298_s1, %s1299_s14  }
  0x66   :  { %s1304_s24 = smov [#allocation13]   ;;  %s1305_s27 = smov [#allocation14]  }
  0x67   :  { %s94_s25 = sshll.u32 %s1304_s24, 4  ;;  %s108_s28 = sshll.u32 %s1305_s27, 4  ;;  %s95_s25 = int_to_ptr.vmem [resolvable:$true] %s94_s25  ;;  %s1460_s28 = int_to_ptr.vmem [resolvable:$true] %s108_s28 }
  0x68   :  { %s1218_s16 = scalar_lea.hbm %s1590_s7, 2048 }
  0x69   :  { %p1219_p6 = scmp.ne.s32.totalorder %s1590_s7, %s1218_s16  ;;  %p1222_p7 = scmp.lt.u32.totalorder %s1218_s16, %s1590_s7 }
  0x6b   :  { %p1224_p8 = pnand %p1222_p7, %p1219_p6 }
  0x6d   :  { %1227 = shalt.err (!%p1224_p8)
}
  0x6e   :  { %s1228_s5 = scalar_lea.vmem %s95_s25, 2048  ;;  %p1233_p10 = scmp.lt.s32.totalorder %s95_s25, %s95_s25 }
  0x6f   :  { %p1229_p9 = scmp.ne.s32.totalorder %s95_s25, %s1228_s5  ;;  %p1234_p11 = scmp.lt.s32.totalorder %s1228_s5, %s1228_s5 }
  0x71   :  { %p1235_p12 = por %p1234_p11, %p1233_p10 }
  0x73   :  { %p1236_p13 = pnand %p1235_p12, %p1229_p9 }
  0x75   :  { %1239 = shalt.err (!%p1236_p13)
}
  0x76   :  { %100 = dma.hbm_to_vmem [thread:$0]  %s1590_s7, 2048, %s95_s25, [#allocation12], %s1298_s1, %s1298_s1, %s1299_s14  }
  0x77   :  { %s1240_s17 = scalar_lea.hbm %s1592_s9, 2048 }
  0x78   :  { %p1241_p0 = scmp.ne.s32.totalorder %s1592_s9, %s1240_s17  ;;  %p1244_p1 = scmp.lt.u32.totalorder %s1240_s17, %s1592_s9 }
  0x7a   :  { %p1246_p2 = pnand %p1244_p1, %p1241_p0 }
  0x7c   :  { %1249 = shalt.err (!%p1246_p2)
}
  0x7d   :  { %s1250_s20 = scalar_lea.vmem %s1460_s28, 2048  ;;  %p1255_p4 = scmp.lt.s32.totalorder %s1460_s28, %s1460_s28 }
  0x7e   :  { %p1251_p3 = scmp.ne.s32.totalorder %s1460_s28, %s1250_s20  ;;  %p1256_p5 = scmp.lt.s32.totalorder %s1250_s20, %s1250_s20 }
  0x80   :  { %p1257_p6 = por %p1256_p5, %p1255_p4 }
  0x82   :  { %p1258_p7 = pnand %p1257_p6, %p1251_p3 }
  0x84   :  { %1261 = shalt.err (!%p1258_p7)
}
  0x85   :  { %114 = dma.hbm_to_vmem [thread:$0]  %s1592_s9, 2048, %s1460_s28, [#allocation15], %s1298_s1, %s1298_s1, %s1299_s14  }
  0x86   :  { %1284 = dma.done.wait [#allocation3], 128  }
  0x87   :  { %1285 = vsyncadd [#allocation3], 4294967168 }
  0x88   :  { %1286 = dma.done.wait [#allocation6], 256  }
  0x89   :  { %1287 = vsyncadd [#allocation6], 4294967040 }
  0x8a   :  { %1288 = dma.done.wait [#allocation9], 4096  }
  0x8b   :  { %1289 = vsyncadd [#allocation9], 4294963200 }
  0x8c   :  { %1290 = dma.done.wait [#allocation12], 4096  }
  0x8d   :  { %1291 = vsyncadd [#allocation12], 4294963200 }
  0x8e   :  { %1292 = dma.done.wait [#allocation15], 2048  }
  0x8f   :  { %1293 = vsyncadd [#allocation15], 4294965248  ;;  %v1306_v0 = vmov 0.0|0.0   ;;  %vm1307_vm0 = vmmov 0   ;;  %v1308_v1 = vmov 0.0   ;;  %v190_v2 = vld [vmem:[#allocation10] sm:$0xff] }
  0x90   :  { %948 = vmatprep.subr.bf16.mxu0 %v1306_v0  ;;  %972 = vmatprep.subr.bf16.mxu1 %v1306_v0  ;;  %v191_v3 = vld [vmem:[#allocation10 + $0x8] sm:$0xff]  ;;  %v174_v4 = vld [vmem:[#allocation8] sm:$0xff]  ;;  %v192_v7 = vld [vmem:[#allocation10 + $0x10] sm:$0xff] }
  0x91   :  { %805 = vmatprep.mubr.msk.f32.mxu0 %vm1307_vm0, %v1308_v1  ;;  %840 = vmatprep.mubr.msk.f32.mxu1 %vm1307_vm0, %v1308_v1  ;;  %v949_v5 = vpack.c.bf16 %v191_v3, %v190_v2  ;;  %v175_v6 = vld [vmem:[#allocation8 + $0x8] sm:$0xff]  ;;  %v193_v8 = vld [vmem:[#allocation10 + $0x18] sm:$0xff]  ;;  %v176_v10 = vld [vmem:[#allocation8 + $0x10] sm:$0xff] }
  0x92   :  { %v973_v9 = vpack.c.bf16 %v175_v6, %v174_v4  ;;  %v177_v11 = vld [vmem:[#allocation8 + $0x18] sm:$0xff]  ;;  %v952_v12 = vpack.c.bf16 %v193_v8, %v192_v7  ;;  %v194_v14 = vld [vmem:[#allocation10 + $0x20] sm:$0xff]  ;;  %v195_v15 = vld [vmem:[#allocation10 + $0x28] sm:$0xff] }
  0x93   :  { %950 = vmatpush3.bf16.msra.mxu0 %v949_v5  ;;  %v976_v13 = vpack.c.bf16 %v177_v11, %v176_v10  ;;  %v178_v16 = vld [vmem:[#allocation8 + $0x20] sm:$0xff]  ;;  %v179_v17 = vld [vmem:[#allocation8 + $0x28] sm:$0xff]  ;;  %v955_v18 = vpack.c.bf16 %v195_v15, %v194_v14  ;;  %v196_v20 = vld [vmem:[#allocation10 + $0x30] sm:$0xff] }
  0x94   :  { %974 = vmatpush3.bf16.msra.mxu1 %v973_v9  ;;  %951 = vmatprep.subr.bf16.mxu0 %v1306_v0  ;;  %v979_v19 = vpack.c.bf16 %v179_v17, %v178_v16  ;;  %v197_v21 = vld [vmem:[#allocation10 + $0x38] sm:$0xff]  ;;  %v180_v22 = vld [vmem:[#allocation8 + $0x30] sm:$0xff]  ;;  %v198_v26 = vld [vmem:[#allocation10 + $0x40] sm:$0xff] }
  0x95   :  { %975 = vmatprep.subr.bf16.mxu1 %v1306_v0  ;;  %v181_v23 = vld [vmem:[#allocation8 + $0x38] sm:$0xff]  ;;  %v958_v24 = vpack.c.bf16 %v197_v21, %v196_v20  ;;  %v199_v27 = vld [vmem:[#allocation10 + $0x48] sm:$0xff]  ;;  %v182_v28 = vld [vmem:[#allocation8 + $0x40] sm:$0xff] }
  0x96   :  { %v982_v25 = vpack.c.bf16 %v181_v23, %v180_v22  ;;  %v183_v29 = vld [vmem:[#allocation8 + $0x48] sm:$0xff]  ;;  %v961_v30 = vpack.c.bf16 %v199_v27, %v198_v26  ;;  %v200_v32 = vld [vmem:[#allocation10 + $0x50] sm:$0xff]  ;;  %v201_v33 = vld [vmem:[#allocation10 + $0x58] sm:$0xff] }
  0x97   :  { %953 = vmatpush3.bf16.msra.mxu0 %v952_v12  ;;  %v985_v31 = vpack.c.bf16 %v183_v29, %v182_v28  ;;  %v184_v34 = vld [vmem:[#allocation8 + $0x50] sm:$0xff]  ;;  %v185_v35 = vld [vmem:[#allocation8 + $0x58] sm:$0xff]  ;;  %v964_v36 = vpack.c.bf16 %v201_v33, %v200_v32  ;;  %v202_v37 = vld [vmem:[#allocation10 + $0x60] sm:$0xff] }
  0x98   :  { %977 = vmatpush3.bf16.msra.mxu1 %v976_v13  ;;  %954 = vmatprep.subr.bf16.mxu0 %v1306_v0  ;;  %v1511_v38 = vld [vmem:[#allocation5] sm:$0xff]  ;;  %v678_v39 = vld [vmem:[%s1586_s3] ss:$0 sm:$0xff]  ;;  %v988_v40 = vpack.c.bf16 %v185_v35, %v184_v34  ;;  %v676_v43 = vld [vmem:[#allocation7] ss:$0 sm:$0xff] }
  0x99   :  { %978 = vmatprep.subr.bf16.mxu1 %v1306_v0  ;;  %v203_v41 = vld [vmem:[#allocation10 + $0x68] sm:$0xff]  ;;  %v186_v44 = vld [vmem:[#allocation8 + $0x60] sm:$0xff]  ;;  %v167_v46 = vmul.f32 %v678_v39, %v1511_v38  ;;  %v204_v51 = vld [vmem:[#allocation10 + $0x70] sm:$0xff] }
  0x9a   :  { %v1517_v42 = vld [vmem:[#allocation2] sm:$0xff]  ;;  %v967_v47 = vpack.c.bf16 %v203_v41, %v202_v37  ;;  %v205_v52 = vld [vmem:[#allocation10 + $0x78] sm:$0xff]  ;;  %v188_v54 = vld [vmem:[#allocation8 + $0x70] sm:$0xff] }
  0x9b   :  { %956 = vmatpush3.bf16.msra.mxu0 %v955_v18  ;;  %v187_v45 = vld [vmem:[#allocation8 + $0x68] sm:$0xff]  ;;  %v156_v49 = vmul.f32 %v676_v43, %v1517_v42  ;;  %v677_v53 = vld [vmem:[#allocation7 + $0x1] ss:$0 sm:$0xff]  ;;  %v970_v57 = vpack.c.bf16 %v205_v52, %v204_v51  ;;  %v389_v60 = vld [vmem:[#allocation13] sm:$0xff] }
  0x9c   :  { %980 = vmatpush3.bf16.msra.mxu1 %v979_v19  ;;  %957 = vmatprep.subr.bf16.mxu0 %v1306_v0  ;;  %v679_v48 = vld [vmem:[%s1586_s3 + $0x1] ss:$0 sm:$0xff]  ;;  %v991_v50 = vpack.c.bf16 %v187_v45, %v186_v44  ;;  %v189_v55 = vld [vmem:[#allocation8 + $0x78] sm:$0xff]  ;;  %v373_v62 = vld [vmem:[#allocation11] sm:$0xff] }
  0x9d   :  { %981 = vmatprep.subr.bf16.mxu1 %v1306_v0  ;;  %v172_v56 = vadd.f32 %v679_v48, %v167_v46  ;;  %v161_v58 = vadd.f32 %v677_v53, %v156_v49  ;;  %v994_v59 = vpack.c.bf16 %v189_v55, %v188_v54  ;;  %v390_v61 = vld [vmem:[#allocation13 + $0x8] sm:$0xff]  ;;  %v391_v6 = vld [vmem:[#allocation13 + $0x10] sm:$0xff]  ;;  %v392_v7 = vld [vmem:[#allocation13 + $0x18] sm:$0xff] }
  0x9e   :  { %v374_v63 = vld [vmem:[#allocation11 + $0x8] sm:$0xff]  ;;  %v997_v4 = vpack.c.bf16 %v390_v61, %v389_v60  ;;  %v375_v8 = vld [vmem:[#allocation11 + $0x10] sm:$0xff]  ;;  %v376_v9 = vld [vmem:[#allocation11 + $0x18] sm:$0xff]  ;;  %v1000_v10 = vpack.c.bf16 %v392_v7, %v391_v6 }
  0x9f   :  { %959 = vmatpush3.bf16.msra.mxu0 %v958_v24  ;;  %v173_v2 = vmax.f32 %v172_v56, 0.0  ;;  %v162_v3 = vmax.f32 %v161_v58, 0.0  ;;  %v1021_v5 = vpack.c.bf16 %v374_v63, %v373_v62  ;;  %v1024_v11 = vpack.c.bf16 %v376_v9, %v375_v8  ;;  %v393_v12 = vld [vmem:[#allocation13 + $0x20] sm:$0xff]  ;;  %v394_v13 = vld [vmem:[#allocation13 + $0x28] sm:$0xff]  ;;  %v395_v18 = vld [vmem:[#allocation13 + $0x30] sm:$0xff] }
  0xa0   :  { %983 = vmatpush3.bf16.msra.mxu1 %v982_v25  ;;  %960 = vmatprep.subr.bf16.mxu0 %v1306_v0  ;;  %v377_v14 = vld [vmem:[#allocation11 + $0x20] sm:$0xff]  ;;  %v378_v15 = vld [vmem:[#allocation11 + $0x28] sm:$0xff]  ;;  %v1003_v16 = vpack.c.bf16 %v394_v13, %v393_v12  ;;  %v396_v19 = vld [vmem:[#allocation13 + $0x38] sm:$0xff] }
  0xa1   :  { %984 = vmatprep.subr.bf16.mxu1 %v1306_v0  ;;  %v1027_v17 = vpack.c.bf16 %v378_v15, %v377_v14  ;;  %v379_v20 = vld [vmem:[#allocation11 + $0x30] sm:$0xff]  ;;  %v380_v21 = vld [vmem:[#allocation11 + $0x38] sm:$0xff]  ;;  %v1006_v22 = vpack.c.bf16 %v396_v19, %v395_v18  ;;  %v397_v24 = vld [vmem:[#allocation13 + $0x40] sm:$0xff] }
  0xa2   :  { %v1030_v23 = vpack.c.bf16 %v380_v21, %v379_v20  ;;  %v398_v25 = vld [vmem:[#allocation13 + $0x48] sm:$0xff]  ;;  %v381_v26 = vld [vmem:[#allocation11 + $0x40] sm:$0xff]  ;;  %v383_v32 = vld [vmem:[#allocation11 + $0x50] sm:$0xff] }
  0xa3   :  { %962 = vmatpush3.bf16.msra.mxu0 %v961_v30  ;;  %v382_v27 = vld [vmem:[#allocation11 + $0x48] sm:$0xff]  ;;  %v1009_v28 = vpack.c.bf16 %v398_v25, %v397_v24  ;;  %v399_v30 = vld [vmem:[#allocation13 + $0x50] sm:$0xff]  ;;  %v384_v33 = vld [vmem:[#allocation11 + $0x58] sm:$0xff] }
  0xa4   :  { %986 = vmatpush3.bf16.msra.mxu1 %v985_v31  ;;  %963 = vmatprep.subr.bf16.mxu0 %v1306_v0  ;;  %v1033_v29 = vpack.c.bf16 %v382_v27, %v381_v26  ;;  %v400_v31 = vld [vmem:[#allocation13 + $0x58] sm:$0xff]  ;;  %v683_v34 = vld [vmem:[%s1586_s3 + $0x2] ss:$0 sm:$0xff]  ;;  %v401_v37 = vld [vmem:[#allocation13 + $0x60] sm:$0xff] }
  0xa5   :  { %987 = vmatprep.subr.bf16.mxu1 %v1306_v0  ;;  %v1012_v35 = vpack.c.bf16 %v400_v31, %v399_v30  ;;  %v402_v39 = vld [vmem:[#allocation13 + $0x68] sm:$0xff]  ;;  %v385_v41 = vld [vmem:[#allocation11 + $0x60] sm:$0xff]  ;;  %v366_v44 = vmul.f32 %v683_v34, %v1511_v38  ;;  %v403_v49 = vld [vmem:[#allocation13 + $0x70] sm:$0xff] }
  0xa6   :  { %v386_v43 = vld [vmem:[#allocation11 + $0x68] sm:$0xff]  ;;  %v1015_v45 = vpack.c.bf16 %v402_v39, %v401_v37  ;;  %v682_v51 = vld [vmem:[#allocation7 + $0x3] ss:$0 sm:$0xff]  ;;  %v387_v52 = vld [vmem:[#allocation11 + $0x70] sm:$0xff] }
  0xa7   :  { %965 = vmatpush3.bf16.msra.mxu0 %v964_v36  ;;  %v1036_v36 = vpack.c.bf16 %v384_v33, %v383_v32  ;;  %v684_v46 = vld [vmem:[%s1586_s3 + $0x3] ss:$0 sm:$0xff]  ;;  %v1039_v48 = vpack.c.bf16 %v386_v43, %v385_v41  ;;  %v388_v53 = vld [vmem:[#allocation11 + $0x78] sm:$0xff]  ;;  %v556_v62 = vld [vmem:[#allocation14 + $0x10] sm:$0xff] }
  0xa8   :  { %989 = vmatpush3.bf16.msra.mxu1 %v988_v40  ;;  %966 = vmatprep.subr.bf16.mxu0 %v1306_v0  ;;  %v681_v40 = vld [vmem:[#allocation7 + $0x2] ss:$0 sm:$0xff]  ;;  %v371_v38 = vadd.f32 %v684_v46, %v366_v44  ;;  %v1042_v56 = vpack.c.bf16 %v388_v53, %v387_v52  ;;  %v555_v60 = vld [vmem:[#allocation14 + $0x8] sm:$0xff]  ;;  %v560_v6 = vld [vmem:[#allocation14 + $0x30] sm:$0xff] }
  0xa9   :  { %990 = vmatprep.subr.bf16.mxu1 %v1306_v0  ;;  %v557_v63 = vld [vmem:[#allocation14 + $0x18] sm:$0xff]  ;;  %v562_v8 = vld [vmem:[#allocation14 + $0x40] sm:$0xff]  ;;  %v563_v9 = vld [vmem:[#allocation14 + $0x48] sm:$0xff] }
  0xaa   :  { %v565_v12 = vld [vmem:[#allocation14 + $0x58] sm:$0xff]  ;;  %v566_v14 = vld [vmem:[#allocation14 + $0x60] sm:$0xff]  ;;  %v567_v15 = vld [vmem:[#allocation14 + $0x68] sm:$0xff] }
  0xab   :  { %968 = vmatpush3.bf16.msra.mxu0 %v967_v47  ;;  %v355_v47 = vmul.f32 %v681_v40, %v1517_v42  ;;  %v569_v18 = vld [vmem:[#allocation14 + $0x78] sm:$0xff]  ;;  %v685_v27 = vld [vmem:[%s1591_s8] ss:$0 sm:$0xff]  ;;  %s1309_s8 = smov [#allocation16]  }
  0xac   :  { %992 = vmatpush3.bf16.msra.mxu1 %v991_v50  ;;  %969 = vmatprep.subr.bf16.mxu0 %v1306_v0  ;;  %v404_v50 = vld [vmem:[#allocation13 + $0x78] sm:$0xff]  ;;  %s663_s4 = sshll.u32 %s1309_s8, 4  ;;  %s664_s4 = int_to_ptr.vmem [resolvable:$true] %s663_s4 }
  0xad   :  { %993 = vmatprep.subr.bf16.mxu1 %v1306_v0  ;;  %v1018_v54 = vpack.c.bf16 %v404_v50, %v403_v49  ;;  %v360_v55 = vadd.f32 %v682_v51, %v355_v47  ;;  %v680_v32 = vld [vmem:[#allocation7 + $0x4] ss:$0 sm:$0xff]  ;;  %v686_v41 = vld [vmem:[#allocation7 + $0x5] ss:$0 sm:$0xff]  ;;  %v687_v43 = vld [vmem:[#allocation7 + $0x6] ss:$0 sm:$0xff]  ;;  %p1267_p9 = scmp.lt.s32.totalorder %s664_s4, %s664_s4 }
  0xae   :  { %s1262_s16 = scalar_lea.vmem %s664_s4, 128 }
  0xaf   :  { %971 = vmatpush3.bf16.msra.mxu0 %v970_v57  ;;  %v372_v57 = vmax.f32 %v371_v38, 0.0  ;;  %v361_v58 = vmax.f32 %v360_v55, 0.0  ;;  %p1263_p8 = scmp.ne.s32.totalorder %s664_s4, %s1262_s16  ;;  %p1268_p10 = scmp.lt.s32.totalorder %s1262_s16, %s1262_s16 }
  0xb0   :  { %995 = vmatpush3.bf16.msra.mxu1 %v994_v59  ;;  %996 = vmatprep.subr.bf16.mxu0 %v1306_v0  ;;  %v554_v59 = vld [vmem:[#allocation14] sm:$0xff] }
  0xb1   :  { %1020 = vmatprep.subr.bf16.mxu1 %v1306_v0  ;;  %v1045_v61 = vpack.c.bf16 %v555_v60, %v554_v59  ;;  %p1269_p11 = por %p1268_p10, %p1267_p9 }
  0xb2   :  { %806 = vmatmul.mubr.f32.vlgmr.msra.gmra.mrb[0].mxu0 %v173_v2  ;;  %v1048_v2 = vpack.c.bf16 %v557_v63, %v556_v62 }
  0xb3   :  { %841 = vmatmul.mubr.f32.vlgmr.msra.gmra.mrb[0].mxu1 %v162_v3  ;;  %998 = vmatpush3.bf16.msra.mxu0 %v997_v4  ;;  %v558_v3 = vld [vmem:[#allocation14 + $0x20] sm:$0xff]  ;;  %v559_v4 = vld [vmem:[#allocation14 + $0x28] sm:$0xff]  ;;  %p1270_p12 = pnand %p1269_p11, %p1263_p8 }
  0xb4   :  { %1022 = vmatpush3.bf16.msra.mxu1 %v1021_v5  ;;  %999 = vmatprep.subr.bf16.mxu0 %v1306_v0  ;;  %v1051_v5 = vpack.c.bf16 %v559_v4, %v558_v3 }
  0xb5   :  { %1023 = vmatprep.subr.bf16.mxu1 %v1306_v0  ;;  %875 = vmatprep.mubr.msk.f32.mxu0 %vm1307_vm0, %v1308_v1 }
  0xb6   :  { %910 = vmatprep.mubr.msk.f32.mxu1 %vm1307_vm0, %v1308_v1 }
  0xb7   :  { %1001 = vmatpush3.bf16.msra.mxu0 %v1000_v10  ;;  %v1057_v10 = vpack.c.bf16 %v563_v9, %v562_v8 }
  0xb8   :  { %1025 = vmatpush3.bf16.msra.mxu1 %v1024_v11  ;;  %1002 = vmatprep.subr.bf16.mxu0 %v1306_v0  ;;  %v564_v11 = vld [vmem:[#allocation14 + $0x50] sm:$0xff] }
  0xb9   :  { %1026 = vmatprep.subr.bf16.mxu1 %v1306_v0  ;;  %v1060_v13 = vpack.c.bf16 %v565_v12, %v564_v11 }
  0xbb   :  { %1004 = vmatpush3.bf16.msra.mxu0 %v1003_v16  ;;  %v1063_v16 = vpack.c.bf16 %v567_v15, %v566_v14 }
  0xbc   :  { %1028 = vmatpush3.bf16.msra.mxu1 %v1027_v17  ;;  %1005 = vmatprep.subr.bf16.mxu0 %v1306_v0  ;;  %v568_v17 = vld [vmem:[#allocation14 + $0x70] sm:$0xff] }
  0xbd   :  { %1029 = vmatprep.subr.bf16.mxu1 %v1306_v0  ;;  %v1066_v19 = vpack.c.bf16 %v569_v18, %v568_v17 }
  0xbf   :  { %1007 = vmatpush3.bf16.msra.mxu0 %v1006_v22 }
  0xc0   :  { %1031 = vmatpush3.bf16.msra.mxu1 %v1030_v23  ;;  %1008 = vmatprep.subr.bf16.mxu0 %v1306_v0 }
  0xc1   :  { %1032 = vmatprep.subr.bf16.mxu1 %v1306_v0 }
  0xc3   :  { %1010 = vmatpush3.bf16.msra.mxu0 %v1009_v28 }
  0xc4   :  { %1034 = vmatpush3.bf16.msra.mxu1 %v1033_v29  ;;  %1011 = vmatprep.subr.bf16.mxu0 %v1306_v0 }
  0xc5   :  { %1035 = vmatprep.subr.bf16.mxu1 %v1306_v0 }
  0xc7   :  { %1013 = vmatpush3.bf16.msra.mxu0 %v1012_v35 }
  0xc8   :  { %1037 = vmatpush3.bf16.msra.mxu1 %v1036_v36  ;;  %1014 = vmatprep.subr.bf16.mxu0 %v1306_v0 }
  0xc9   :  { %1038 = vmatprep.subr.bf16.mxu1 %v1306_v0 }
  0xcb   :  { %1016 = vmatpush3.bf16.msra.mxu0 %v1015_v45 }
  0xcc   :  { %1040 = vmatpush3.bf16.msra.mxu1 %v1039_v48  ;;  %1017 = vmatprep.subr.bf16.mxu0 %v1306_v0 }
  0xcd   :  { %1041 = vmatprep.subr.bf16.mxu1 %v1306_v0 }
  0xcf   :  { %1019 = vmatpush3.bf16.msra.mxu0 %v1018_v54 }
  0xd0   :  { %1043 = vmatpush3.bf16.msra.mxu1 %v1042_v56  ;;  %1044 = vmatprep.subr.bf16.mxu0 %v1306_v0 }
  0xd2   :  { %876 = vmatmul.mubr.f32.vlgmr.msra.gmra.mrb[2].mxu0 %v372_v57 }
  0xd3   :  { %911 = vmatmul.mubr.f32.vlgmr.msra.gmra.mrb[2].mxu1 %v361_v58  ;;  %945 = vmatprep.mubr.msk.f32.mxu0 %vm1307_vm0, %v1308_v1  ;;  %v561_v1 = vld [vmem:[#allocation14 + $0x38] sm:$0xff] }
  0xd4   :  { %1046 = vmatpush3.bf16.msra.mxu0 %v1045_v61  ;;  %v1054_v7 = vpack.c.bf16 %v561_v1, %v560_v6 }
  0xd5   :  { %1047 = vmatprep.subr.bf16.mxu0 %v1306_v0 }
  0xd8   :  { %1049 = vmatpush3.bf16.msra.mxu0 %v1048_v2 }
  0xd9   :  { %1050 = vmatprep.subr.bf16.mxu0 %v1306_v0 }
  0xdc   :  { %1052 = vmatpush3.bf16.msra.mxu0 %v1051_v5 }
  0xdd   :  { %1053 = vmatprep.subr.bf16.mxu0 %v1306_v0 }
  0xe0   :  { %1055 = vmatpush3.bf16.msra.mxu0 %v1054_v7 }
  0xe1   :  { %1056 = vmatprep.subr.bf16.mxu0 %v1306_v0 }
  0xe4   :  { %1058 = vmatpush3.bf16.msra.mxu0 %v1057_v10 }
  0xe5   :  { %1059 = vmatprep.subr.bf16.mxu0 %v1306_v0 }
  0xe8   :  { %1061 = vmatpush3.bf16.msra.mxu0 %v1060_v13 }
  0xe9   :  { %1062 = vmatprep.subr.bf16.mxu0 %v1306_v0 }
  0xec   :  { %1064 = vmatpush3.bf16.msra.mxu0 %v1063_v16 }
  0xed   :  { %1065 = vmatprep.subr.bf16.mxu0 %v1306_v0 }
  0xf0   :  { %1067 = vmatpush3.bf16.msra.mxu0 %v1066_v19 }
 0x185   :  { %v272_v20 = vpop.f32.mrb[0].mxu0 }
 0x186   :  { %v342_v21 = vpop.f32.mrb[0].mxu1  ;;  %v807_v22 = vpop.f32.mrb[1].mxu0 }
 0x187   :  { %v343_v23 = vadd.f32 %v342_v21, %v272_v20  ;;  %v842_v24 = vpop.f32.mrb[1].mxu1 }
 0x189   :  { %v350_v33 = vadd.f32 %v680_v32, %v343_v23 }
 0x18b   :  { %v644_v34 = vsub.f32 0.0, %v350_v33 }
 0x18d   :  { %v645_v35 = vmul.f32 1.442695, %v644_v34 }
 0x18f   :  { %1082 = vpow2.f32 %v645_v35 }
 0x199   :  { %v1083_v36 = vpop.eup %1082 }
 0x19a   :  { %v647_v37 = vadd.f32 1.0, %v1083_v36 }
 0x19c   :  { %1084 = vrcp.f32 %v647_v37 }
 0x1a5   :  { %v471_v25 = vpop.f32.mrb[2].mxu0 }
 0x1a6   :  { %v541_v26 = vpop.f32.mrb[2].mxu1  ;;  %v877_v28 = vpop.f32.mrb[3].mxu0 }
 0x1a7   :  { %v542_v29 = vadd.f32 %v541_v26, %v471_v25  ;;  %v912_v30 = vpop.f32.mrb[3].mxu1  ;;  %v1085_v39 = vpop.eup %1084 }
 0x1a8   :  { %v649_v40 = vmul.f32 %v1085_v39, %v1517_v42 }
 0x1a9   :  { %v552_v31 = vadd.f32 %v685_v27, %v542_v29 }
 0x1aa   :  { %v654_v46 = vmul.f32 %v687_v43, %v649_v40 }
 0x1ab   :  { %v553_v0 = vmax.f32 %v552_v31, 0.0 }
 0x1ad   :  { %946 = vmatmul.mubr.f32.vlgmr.msra.gmra.mrb[4].mxu0 %v553_v0 }
 0x280   :  { %v640_v44 = vpop.f32.mrb[4].mxu0 }
 0x281   :  { %v641_v45 = vadd.f32 %v686_v41, %v640_v44  ;;  %v947_v47 = vpop.f32.mrb[5].mxu0 }
 0x283   :  { %v655_v48 = vadd.f32 %v654_v46, %v641_v45 }
 0x285   :  { %656 = vst [vmem:[#allocation16] sm:$0xff] %v655_v48 }
 0x286   :  { %1273 = shalt.err (!%p1270_p12)
}
 0x287   :  { %s1274_s0 = scalar_lea.hbm %s1593_s10, 128 }
 0x288   :  { %p1275_p13 = scmp.ne.s32.totalorder %s1593_s10, %s1274_s0  ;;  %p1278_p0 = scmp.lt.u32.totalorder %s1274_s0, %s1593_s10 }
 0x28a   :  { %p1280_p1 = pnand %p1278_p0, %p1275_p13 }
 0x28c   :  { %1283 = shalt.err (!%p1280_p1)
}
 0x28d   :  { %666 = dma.vmem_to_hbm [thread:$0]  %s664_s4, 128, %s1593_s10, [#allocation4]  }
 0x28e   :  { %1294 = dma.done.wait [#allocation4], 128  }
 0x28f   :  { %1295 = vsyncadd [#allocation4], 4294967168 }
 0x290   :  { %670 = vsyncpa [#allocation3], 1 }
 0x291   :  { %671 = vsyncpa [#allocation6], 1 }
 0x292   :  { %672 = vsyncpa [#allocation9], 1 }
 0x293   :  { %673 = vsyncpa [#allocation12], 1 }
 0x294   :  { %674 = vsyncpa [#allocation15], 1 }
 0x295   :  { %675 = vsyncpa [#allocation4], 1 }

</bundles_post_ra>
